<compile_context>
chip_gen: v6e
topology: v6e:2x2x1
jax: 0.10.0
libtpu: 0.0.40
codegen_flags: <defaults>
</compile_context>

<pallas_src>
import functools

import jax
import jax.numpy as jnp
from jax.experimental import pallas as pl
from jax.experimental.pallas import tpu as pltpu


def _label_smoothing_kernel(x_ref, tgt_ref, out_ref, m_ref, l_ref, s_ref, *,
                            confidence, smoothing, n_valid, c_valid,
                            row_tile, col_tile):
    """One (row-tile, class-tile) step of the smoothed-NLL reduction."""
    i = pl.program_id(0)                       # row-tile index   ("parallel")
    j = pl.program_id(1)                       # class-tile index ("arbitrary")

    @pl.when(j == 0)
    def _():
        m_ref[...] = jnp.full(m_ref.shape, -jnp.inf, dtype=jnp.float32)
        l_ref[...] = jnp.zeros(l_ref.shape, dtype=jnp.float32)
        s_ref[...] = jnp.zeros(s_ref.shape, dtype=jnp.float32)

    x = x_ref[...].astype(jnp.float32)         # (TN, TC) f32 compute
    tgt = tgt_ref[...]                         # (TN, 1) int32
    tn, tc = x.shape

    # Global class ids for this column tile; mask the ragged last C tile.
    class_ids = j * col_tile + jax.lax.broadcasted_iota(jnp.int32, (tn, tc), 1)
    col_ok = class_ids < c_valid

    # --- online logsumexp over the class axis ---
    m_prev = m_ref[...]
    blk_max = jnp.max(jnp.where(col_ok, x, -jnp.inf), axis=-1, keepdims=True)
    m_new = jnp.maximum(m_prev, blk_max)
    alpha = jnp.exp(m_prev - m_new)
    p = jnp.where(col_ok, jnp.exp(x - m_new), 0.0)
    l_ref[...] = alpha * l_ref[...] + jnp.sum(p, axis=-1, keepdims=True)
    m_ref[...] = m_new

    # --- fused weighted sum:  sum_j w_j * x_j,  w_j = sm/C + conf*[j==tgt] ---
    base_w = smoothing / float(c_valid)
    w = jnp.where(class_ids == tgt, confidence + base_w, base_w)
    s_ref[...] = s_ref[...] + jnp.sum(jnp.where(col_ok, w * x, 0.0),
                                      axis=-1, keepdims=True)

    @pl.when(j == pl.num_programs(1) - 1)
    def _():
        lse = m_ref[...] + jnp.log(l_ref[...])           # (TN, 1)
        loss = lse - s_ref[...]                          # (TN, 1)
        # Mask rows past the true batch size (ragged last row tile, no pad).
        row_ids = i * row_tile + jax.lax.broadcasted_iota(jnp.int32, (tn, 1), 0)
        loss = jnp.where(row_ids < n_valid, loss, 0.0)
        partial = jnp.sum(loss)                          # scalar f32
        # Lane-dense unmasked store; the wrapper reads element [i, 0, 0].
        out_ref[...] = jnp.broadcast_to(partial, out_ref.shape).astype(jnp.float32)


def _vmem_capacity_bytes():
    try:
        return int(pltpu.get_tpu_info().vmem_capacity_bytes)
    except Exception:  # pragma: no cover - fallback if query unavailable
        return 64 << 20        # conservative: v7x per-TensorCore VMEM


def _choose_tiles(n, c, in_itemsize, vmem_bytes, c_tile=None):
    """Pick (row_tile, col_tile) from the f32 compute footprint of one block."""
    row_mult = 8 if in_itemsize >= 4 else (16 if in_itemsize == 2 else 32)
    # Per-element VMEM cost of one (TN, TC) block while it is live:
    #   2 * itemsize   double-buffered input DMA buffers
    #   ~12 bytes      in-kernel f32 temporaries (cast / exp / weighted product)
    per_elem = 2 * in_itemsize + 12
    budget = max(int(vmem_bytes * 0.4), 8 << 20)   # leave >half for everything else
    max_elems = budget // per_elem

    if c_tile is not None:
        tc = int(c_tile)                            # explicit override (tests)
    elif c * row_mult <= max_elems:
        tc = c                                      # full-C blocks, tile rows only
    else:
        tc = max(128, ((max_elems // row_mult) // 128) * 128)  # lane-aligned C tile

    tn = max_elems // max(tc, 1)
    tn = max(row_mult, (tn // row_mult) * row_mult)
    tn = min(tn, 4096)

    if n < row_mult:
        tn = n                                      # block == full (tiny) batch dim
    else:
        n_ceil = ((n + row_mult - 1) // row_mult) * row_mult
        tn = min(tn, n_ceil)
        # Keep >=2 row tiles when possible so the "parallel" axis can be split
        # across v7x's two TensorCores.
        if n > row_mult and pl.cdiv(n, tn) < 2:
            tn = max(row_mult, ((n_ceil // 2) // row_mult) * row_mult)
    return int(tn), int(tc)


def label_smoothing_loss(x, target, smoothing=0.1, *, c_tile=None):
    """x: (N, C) float logits (f32 or bf16), target: (N,) int labels -> scalar f32."""
    n, c = x.shape
    confidence = 1.0 - smoothing
    itemsize = jnp.dtype(x.dtype).itemsize

    vmem_cap = _vmem_capacity_bytes()
    tn, tc = _choose_tiles(n, c, itemsize, vmem_cap, c_tile=c_tile)
    num_row_tiles = pl.cdiv(n, tn)
    num_col_tiles = pl.cdiv(c, tc)

    tgt = target.astype(jnp.int32).reshape(n, 1)

    kernel = functools.partial(
        _label_smoothing_kernel,
        confidence=confidence, smoothing=smoothing,
        n_valid=n, c_valid=c, row_tile=tn, col_tile=tc)

    # Honest VMEM accounting: double-buffered input, in-kernel f32 temporaries,
    # lane-padded (TN,1) target / scratch columns, output slab double buffer,
    # plus slack for compiler-internal scratch.  Capped at 75% of capacity.
    vmem_needed = (2 * tn * tc * itemsize       # x double buffer
                   + 3 * tn * tc * 4            # in-kernel f32 temporaries
                   + 2 * tn * 512               # target blocks (padded to 128 lanes)
                   + 3 * tn * 512               # m/l/s scratch (padded to 128 lanes)
                   + 2 * 8 * 128 * 4            # output slab double buffer
                   + (2 << 20))
    vmem_limit = int(min(max(vmem_needed, 32 << 20), int(vmem_cap * 0.75)))

    partials = pl.pallas_call(
        kernel,
        out_shape=jax.ShapeDtypeStruct((num_row_tiles, 8, 128), jnp.float32),
        grid=(num_row_tiles, num_col_tiles),
        in_specs=[
            pl.BlockSpec((tn, tc), lambda i, j: (i, j)),
            pl.BlockSpec((tn, 1), lambda i, j: (i, 0)),
        ],
        out_specs=pl.BlockSpec((1, 8, 128), lambda i, j: (i, 0, 0)),
        scratch_shapes=[pltpu.VMEM((tn, 1), jnp.float32)] * 3,
        compiler_params=pltpu.CompilerParams(
            dimension_semantics=("parallel", "arbitrary"),
            vmem_limit_bytes=vmem_limit,
        ),
    )(x, tgt)

    # Final (cheap) reduction in plain JAX: sum of per-tile partials / true N.
    return jnp.sum(partials[:, 0, 0]) / n


def _reference(x, target, smoothing=0.1):
    logprobs = jax.nn.log_softmax(x.astype(jnp.float32), axis=-1)
    nll = -jnp.take_along_axis(logprobs, target[:, None], axis=-1)[:, 0]
    smooth = -jnp.mean(logprobs, axis=-1)
    return jnp.mean((1.0 - smoothing) * nll + smoothing * smooth)


# TODO(synk): the PyTorch module has no ignore_index / padding-token handling,
# so none is implemented here either.

if __name__ == "__main__":
    key = jax.random.PRNGKey(0)
    k = jax.random.split(key, 6)

    # Case 1: lane-aligned C, batch a multiple of 8 (single block).
    N1, C1 = 8, 128
    x1 = jax.random.normal(k[0], (N1, C1), dtype=jnp.float32)
    t1 = jax.random.randint(k[1], (N1,), 0, C1, dtype=jnp.int32)
    loss1 = label_smoothing_loss(x1, t1, smoothing=0.1)
    jax.block_until_ready(loss1)
    ref1 = _reference(x1, t1, smoothing=0.1)
    assert jnp.allclose(loss1, ref1, atol=1e-5, rtol=1e-5), (loss1, ref1)

    # Case 2: batch not a multiple of the row tile (ragged last row block, no pad).
    N2, C2 = 12, 256
    x2 = jax.random.normal(k[2], (N2, C2), dtype=jnp.float32)
    t2 = jax.random.randint(k[3], (N2,), 0, C2, dtype=jnp.int32)
    loss2 = label_smoothing_loss(x2, t2, smoothing=0.1)
    jax.block_until_ready(loss2)
    ref2 = _reference(x2, t2, smoothing=0.1)
    assert jnp.allclose(loss2, ref2, atol=1e-5, rtol=1e-5), (loss2, ref2)

    # Case 3: bf16 logits, ragged rows AND ragged class tiles — exercises the
    # online-logsumexp path across 3 C-tiles of 128 covering C=300.
    N3, C3 = 20, 300
    x3 = jax.random.normal(k[4], (N3, C3), dtype=jnp.float32).astype(jnp.bfloat16)
    t3 = jax.random.randint(k[5], (N3,), 0, C3, dtype=jnp.int32)
    loss3 = label_smoothing_loss(x3, t3, smoothing=0.1, c_tile=128)
    jax.block_until_ready(loss3)
    ref3 = _reference(x3, t3, smoothing=0.1)
    assert jnp.allclose(loss3, ref3, atol=1e-4, rtol=1e-4), (loss3, ref3)

    print("KERNEL_OK")
</pallas_src>

<mosaic_0001>
module attributes {stable_mosaic.version = 11 : i64} {
  func.func @_label_smoothing_kernel(%arg0: i32, %arg1: i32, %arg2: memref<8x128xf32, #tpu.memory_space<vmem>>, %arg3: memref<8x1xi32, #tpu.memory_space<vmem>>, %arg4: memref<1x8x128xf32, #tpu.memory_space<vmem>>, %arg5: memref<8x1xf32, #tpu.memory_space<vmem>>, %arg6: memref<8x1xf32, #tpu.memory_space<vmem>>, %arg7: memref<8x1xf32, #tpu.memory_space<vmem>>) attributes {dimension_semantics = [#tpu.dimension_semantics<parallel>, #tpu.dimension_semantics<arbitrary>], iteration_bounds = array<i64: 1, 1>, scalar_prefetch = 0 : i64, scratch_operands = 3 : i64, tpu.core_type = #tpu.core_type<tc>, window_params = [{transform_indices = @transform_0, window_bounds = array<i64: 8, 128>}, {transform_indices = @transform_1, window_bounds = array<i64: 8, 1>}, {transform_indices = @transform_2, window_bounds = array<i64: 1, 8, 128>}]} {
    %c0_i32 = arith.constant 0 : i32
    %0 = arith.cmpi eq, %arg1, %c0_i32 : i32
    %1 = arith.extui %0 : i1 to i32
    %c0_i32_0 = arith.constant 0 : i32
    %2 = arith.cmpi ne, %1, %c0_i32_0 : i32
    scf.if %2 {
      %cst_26 = arith.constant 0xFF800000 : f32
      %47 = vector.broadcast %cst_26 : f32 to vector<8x1xf32>
      %c0_27 = arith.constant 0 : index
      %c0_28 = arith.constant 0 : index
      %48 = vector.load %arg5[%c0_27, %c0_28] : memref<8x1xf32, #tpu.memory_space<vmem>>, vector<8x1xf32>
      tpu.vector_store %arg5[%c0_27, %c0_28], %47 {strides = array<i32>} : memref<8x1xf32, #tpu.memory_space<vmem>>, vector<8x1xf32>,
      %cst_29 = arith.constant 0.000000e+00 : f32
      %49 = vector.broadcast %cst_29 : f32 to vector<8x1xf32>
      %c0_30 = arith.constant 0 : index
      %c0_31 = arith.constant 0 : index
      %50 = vector.load %arg6[%c0_30, %c0_31] : memref<8x1xf32, #tpu.memory_space<vmem>>, vector<8x1xf32>
      tpu.vector_store %arg6[%c0_30, %c0_31], %49 {strides = array<i32>} : memref<8x1xf32, #tpu.memory_space<vmem>>, vector<8x1xf32>,
      %cst_32 = arith.constant 0.000000e+00 : f32
      %51 = vector.broadcast %cst_32 : f32 to vector<8x1xf32>
      %c0_33 = arith.constant 0 : index
      %c0_34 = arith.constant 0 : index
      %52 = vector.load %arg7[%c0_33, %c0_34] : memref<8x1xf32, #tpu.memory_space<vmem>>, vector<8x1xf32>
      tpu.vector_store %arg7[%c0_33, %c0_34], %51 {strides = array<i32>} : memref<8x1xf32, #tpu.memory_space<vmem>>, vector<8x1xf32>,
    } else {
    }
    %c0 = arith.constant 0 : index
    %c0_1 = arith.constant 0 : index
    %3 = vector.load %arg2[%c0, %c0_1] : memref<8x128xf32, #tpu.memory_space<vmem>>, vector<8x128xf32>
    %c0_2 = arith.constant 0 : index
    %c0_3 = arith.constant 0 : index
    %4 = vector.load %arg3[%c0_2, %c0_3] : memref<8x1xi32, #tpu.memory_space<vmem>>, vector<8x1xi32>
    %c128_i32 = arith.constant 128 : i32
    %5 = arith.muli %arg1, %c128_i32 : i32
    %6 = tpu.iota {dimensions = array<i32: 1>} : vector<8x128xi32>
    %7 = vector.broadcast %5 : i32 to vector<8x128xi32>
    %8 = arith.addi %7, %6 : vector<8x128xi32>
    %c128_i32_4 = arith.constant 128 : i32
    %9 = vector.broadcast %c128_i32_4 : i32 to vector<8x128xi32>
    %10 = arith.cmpi slt, %8, %9 : vector<8x128xi32>
    %c0_5 = arith.constant 0 : index
    %c0_6 = arith.constant 0 : index
    %11 = vector.load %arg5[%c0_5, %c0_6] : memref<8x1xf32, #tpu.memory_space<vmem>>, vector<8x1xf32>
    %cst = arith.constant 0xFF800000 : f32
    %12 = vector.broadcast %cst : f32 to vector<8x128xf32>
    %13 = arith.select %10, %3, %12 : vector<8x128xi1>, vector<8x128xf32>
    %cst_7 = arith.constant dense<0xFF800000> : vector<8xf32>
    %14 = vector.multi_reduction <maximumf>, %13, %cst_7 [1] : vector<8x128xf32> to vector<8xf32>
    %15 = vector.shape_cast %14 : vector<8xf32> to vector<8x1xf32>
    %16 = arith.maximumf %11, %15 : vector<8x1xf32>
    %17 = arith.subf %11, %16 : vector<8x1xf32>
    %18 = math.exp %17 : vector<8x1xf32>
    %19 = vector.broadcast %16 : vector<8x1xf32> to vector<8x128xf32>
    %20 = arith.subf %3, %19 : vector<8x128xf32>
    %21 = math.exp %20 : vector<8x128xf32>
    %cst_8 = arith.constant 0.000000e+00 : f32
    %22 = vector.broadcast %cst_8 : f32 to vector<8x128xf32>
    %23 = arith.select %10, %21, %22 : vector<8x128xi1>, vector<8x128xf32>
    %c0_9 = arith.constant 0 : index
    %c0_10 = arith.constant 0 : index
    %24 = vector.load %arg6[%c0_9, %c0_10] : memref<8x1xf32, #tpu.memory_space<vmem>>, vector<8x1xf32>
    %25 = arith.mulf %18, %24 : vector<8x1xf32>
    %cst_11 = arith.constant dense<0.000000e+00> : vector<8xf32>
    %26 = vector.multi_reduction <add>, %23, %cst_11 [1] : vector<8x128xf32> to vector<8xf32>
    %27 = vector.shape_cast %26 : vector<8xf32> to vector<8x1xf32>
    %28 = arith.addf %25, %27 : vector<8x1xf32>
    %c0_12 = arith.constant 0 : index
    %c0_13 = arith.constant 0 : index
    %29 = vector.load %arg6[%c0_12, %c0_13] : memref<8x1xf32, #tpu.memory_space<vmem>>, vector<8x1xf32>
    tpu.vector_store %arg6[%c0_12, %c0_13], %28 {strides = array<i32>} : memref<8x1xf32, #tpu.memory_space<vmem>>, vector<8x1xf32>,
    %c0_14 = arith.constant 0 : index
    %c0_15 = arith.constant 0 : index
    %30 = vector.load %arg5[%c0_14, %c0_15] : memref<8x1xf32, #tpu.memory_space<vmem>>, vector<8x1xf32>
    tpu.vector_store %arg5[%c0_14, %c0_15], %16 {strides = array<i32>} : memref<8x1xf32, #tpu.memory_space<vmem>>, vector<8x1xf32>,
    %31 = vector.broadcast %4 : vector<8x1xi32> to vector<8x128xi32>
    %32 = arith.cmpi eq, %8, %31 : vector<8x128xi32>
    %cst_16 = arith.constant 0.900781273 : f32
    %cst_17 = arith.constant 7.812500e-04 : f32
    %33 = vector.broadcast %cst_16 : f32 to vector<8x128xf32>
    %34 = vector.broadcast %cst_17 : f32 to vector<8x128xf32>
    %35 = arith.select %32, %33, %34 : vector<8x128xi1>, vector<8x128xf32>
    %c0_18 = arith.constant 0 : index
    %c0_19 = arith.constant 0 : index
    %36 = vector.load %arg7[%c0_18, %c0_19] : memref<8x1xf32, #tpu.memory_space<vmem>>, vector<8x1xf32>
    %37 = arith.mulf %35, %3 : vector<8x128xf32>
    %cst_20 = arith.constant 0.000000e+00 : f32
    %38 = vector.broadcast %cst_20 : f32 to vector<8x128xf32>
    %39 = arith.select %10, %37, %38 : vector<8x128xi1>, vector<8x128xf32>
    %cst_21 = arith.constant dense<0.000000e+00> : vector<8xf32>
    %40 = vector.multi_reduction <add>, %39, %cst_21 [1] : vector<8x128xf32> to vector<8xf32>
    %41 = vector.shape_cast %40 : vector<8xf32> to vector<8x1xf32>
    %42 = arith.addf %36, %41 : vector<8x1xf32>
    %c0_22 = arith.constant 0 : index
    %c0_23 = arith.constant 0 : index
    %43 = vector.load %arg7[%c0_22, %c0_23] : memref<8x1xf32, #tpu.memory_space<vmem>>, vector<8x1xf32>
    tpu.vector_store %arg7[%c0_22, %c0_23], %42 {strides = array<i32>} : memref<8x1xf32, #tpu.memory_space<vmem>>, vector<8x1xf32>,
    %c0_i32_24 = arith.constant 0 : i32
    %44 = arith.cmpi eq, %arg1, %c0_i32_24 : i32
    %45 = arith.extui %44 : i1 to i32
    %c0_i32_25 = arith.constant 0 : i32
    %46 = arith.cmpi ne, %45, %c0_i32_25 : i32
    scf.if %46 {
      %c0_26 = arith.constant 0 : index
      %c0_27 = arith.constant 0 : index
      %47 = vector.load %arg5[%c0_26, %c0_27] : memref<8x1xf32, #tpu.memory_space<vmem>>, vector<8x1xf32>
      %c0_28 = arith.constant 0 : index
      %c0_29 = arith.constant 0 : index
      %48 = vector.load %arg6[%c0_28, %c0_29] : memref<8x1xf32, #tpu.memory_space<vmem>>, vector<8x1xf32>
      %49 = math.log %48 : vector<8x1xf32>
      %50 = arith.addf %47, %49 : vector<8x1xf32>
      %c0_30 = arith.constant 0 : index
      %c0_31 = arith.constant 0 : index
      %51 = vector.load %arg7[%c0_30, %c0_31] : memref<8x1xf32, #tpu.memory_space<vmem>>, vector<8x1xf32>
      %52 = arith.subf %50, %51 : vector<8x1xf32>
      %c8_i32 = arith.constant 8 : i32
      %53 = arith.muli %arg0, %c8_i32 : i32
      %54 = tpu.iota {dimensions = array<i32: 0>} : vector<8x1xi32>
      %55 = vector.broadcast %53 : i32 to vector<8x1xi32>
      %56 = arith.addi %55, %54 : vector<8x1xi32>
      %c8_i32_32 = arith.constant 8 : i32
      %57 = vector.broadcast %c8_i32_32 : i32 to vector<8x1xi32>
      %58 = arith.cmpi slt, %56, %57 : vector<8x1xi32>
      %cst_33 = arith.constant 0.000000e+00 : f32
      %59 = vector.broadcast %cst_33 : f32 to vector<8x1xf32>
      %60 = arith.select %58, %52, %59 : vector<8x1xi1>, vector<8x1xf32>
      %61 = vector.shape_cast %60 : vector<8x1xf32> to vector<1x8x1xf32>
      %cst_34 = arith.constant dense<0.000000e+00> : vector<1xf32>
      %62 = vector.multi_reduction <add>, %61, %cst_34 [1, 2] : vector<1x8x1xf32> to vector<1xf32>
      %63 = vector.shape_cast %62 : vector<1xf32> to vector<1x1x1xf32>
      %64 = vector.extract %63[0, 0, 0] : f32 from vector<1x1x1xf32>
      %65 = vector.broadcast %64 : f32 to vector<1x8x128xf32>
      %c0_35 = arith.constant 0 : index
      %c0_36 = arith.constant 0 : index
      %c0_37 = arith.constant 0 : index
      %66 = vector.load %arg4[%c0_35, %c0_36, %c0_37] : memref<1x8x128xf32, #tpu.memory_space<vmem>>, vector<1x8x128xf32>
      tpu.vector_store %arg4[%c0_35, %c0_36, %c0_37], %65 {strides = array<i32>} : memref<1x8x128xf32, #tpu.memory_space<vmem>>, vector<1x8x128xf32>,
    } else {
    }
    return
  }
  func.func @transform_0(%arg0: i32, %arg1: i32) -> (i32, i32) {
    %c0_i32 = arith.constant 0 : i32
    return %arg0, %arg1 : i32, i32
  }
  func.func @transform_1(%arg0: i32, %arg1: i32) -> (i32, i32) {
    %c0_i32 = arith.constant 0 : i32
    %c0_i32_0 = arith.constant 0 : i32
    return %arg0, %c0_i32 : i32, i32
  }
  func.func @transform_2(%arg0: i32, %arg1: i32) -> (i32, i32, i32) {
    %c0_i32 = arith.constant 0 : i32
    %c0_i32_0 = arith.constant 0 : i32
    %c0_i32_1 = arith.constant 0 : i32
    return %arg0, %c0_i32, %c0_i32_0 : i32, i32, i32
  }
}

</mosaic_0001>

<bundles_post_ra>
// kernel: tpu_custom_call.1
= control target key start
LH: loop header
LB: loop body
LE: loop exit
PB: predicated region body
PF: predicated region fallthrough
CT: control target
= control target key end

     0   :  { %s181_s0 = inlined_call_operand.vmem [shape: f32[8,128], index: 0, kind: input, shape index: {}]   ;;  %s182_s1 = inlined_call_operand.vmem [shape: s32[8,1], index: 1, kind: input, shape index: {}]   ;;  %s183_s2 = inlined_call_operand.hbm [shape: f32[1,8,128], index: 2, kind: output, shape index: {}]  }
   0x1   :  { %v20_v0 = vld [vmem:[%s181_s0] sm:$0xff] }
   0x2   :  { %7 = vsyncpa [#allocation6], 0  ;;  %30 = vmax.xlane.f32.xlu0 %v20_v0  ;;  %vm16_vm0 = vcmask 7168   ;;  %v145_v1 = vmov -inf   ;;  %v146_v2 = vmov 0   ;;  %v21_v3 = vld [vmem:[%s182_s1] sm:$0xff]  ;;  %v23_v12 = vlaneseq }
   0x3   :  { %17 = vst.msk [vmem:[#allocation2] sm:$0xff] %vm16_vm0, %v145_v1  ;;  %115 = vset.pattern.permute.xlu0 %v146_v2  ;;  %116 = vset.pattern.permute.xlu1 %v146_v2  ;;  %v147_v4 = vmov 0.0   ;;  %v148_v15 = vmov 0.00078125   ;;  %s149_s0 = smov [#allocation5]  }
   0x4   :  { %54 = vperm.xlu1 %116, %v21_v3   ;;  %18 = vst.msk [vmem:[#allocation3] sm:$0xff] %vm16_vm0, %v147_v4  ;;  %19 = vst.msk [vmem:[#allocation4] sm:$0xff] %vm16_vm0, %v147_v4  ;;  %v24_v13 = vand.u32 127, %v23_v12  ;;  %s100_s1 = sshll.u32 %s149_s0, 4  ;;  %s101_s1 = int_to_ptr.vmem [resolvable:$true] %s100_s1 }
   0x5   :  { %s123_s14 = scalar_lea.vmem %s101_s1, 128  ;;  %p128_p1 = scmp.lt.s32.totalorder %s101_s1, %s101_s1 }
   0x6   :  { %p124_p0 = scmp.ne.s32.totalorder %s101_s1, %s123_s14  ;;  %p129_p2 = scmp.lt.s32.totalorder %s123_s14, %s123_s14 }
   0x8   :  { %p130_p3 = por %p129_p2, %p128_p1 }
   0xa   :  { %v28_v5 = vld [vmem:[#allocation2] sm:$0xff]  ;;  %p131_p4 = pnand %p130_p3, %p124_p0 }
   0xb   :  { %v45_v21 = vld [vmem:[#allocation3] sm:$0xff]  ;;  %v58_v25 = vld [vmem:[#allocation4] sm:$0xff] }
  0x7f   :  { %v55_v14 = vpop.permute.xlu1 %54 }
  0x80   :  { %vm56_vm1 = vcmp.eq.s32.totalorder %v24_v13, %v55_v14 }
  0x81   :  { %v57_v16 = vsel %vm56_vm1, 0.9007813, %v148_v15 }
  0x82   :  { %v59_v18 = vmul.f32 %v57_v16, %v20_v0 }
  0x8b   :  { %v31_v6 = vpop.xlane.xlu0 %30 }
  0x8c   :  { %v32_v7 = vmax.f32 %v28_v5, %v31_v6 }
  0x8e   :  { %v33_v8 = vsub.f32 %v28_v5, %v32_v7  ;;  %52 = vst.msk [vmem:[#allocation2] sm:$0xff] %vm16_vm0, %v32_v7  ;;  %38 = vperm.xlu0 %115, %v32_v7  }
  0x90   :  { %v34_v19 = vmul.f32 1.442695, %v33_v8 }
  0x95   :  { %v68_v31 = vld [vmem:[#allocation2] sm:$0xff] }
 0x109   :  { %v39_v9 = vpop.permute.xlu0 %38 }
 0x10a   :  { %v41_v10 = vsub.f32 %v20_v0, %v39_v9 }
 0x10c   :  { %v42_v11 = vmul.f32 1.442695, %v41_v10 }
 0x10e   :  { %117 = vpow2.f32 %v42_v11 }
 0x10f   :  { %119 = vpow2.f32 %v34_v19 }
 0x11b   :  { %v118_v17 = vpop.eup %117 }
 0x11c   :  { %47 = vadd.xlane.f32.xlu1 %v118_v17  ;;  %v120_v20 = vpop.eup %119 }
 0x11d   :  { %v46_v22 = vmul.f32 %v120_v20, %v45_v21 }
 0x120   :  { %61 = vadd.xlane.f32.xlu1 %v59_v18 }
 0x1a5   :  { %v48_v23 = vpop.xlane.xlu1 %47 }
 0x1a6   :  { %v49_v24 = vadd.f32 %v48_v23, %v46_v22 }
 0x1a8   :  { %51 = vst.msk [vmem:[#allocation3] sm:$0xff] %vm16_vm0, %v49_v24 }
 0x1a9   :  { %v62_v26 = vpop.xlane.xlu1 %61 }
 0x1aa   :  { %v63_v27 = vadd.f32 %v62_v26, %v58_v25 }
 0x1ac   :  { %64 = vst.msk [vmem:[#allocation4] sm:$0xff] %vm16_vm0, %v63_v27 }
 0x1af   :  { %v69_v28 = vld [vmem:[#allocation3] sm:$0xff] }
 0x1b0   :  { %121 = vlog2.f32 %v69_v28 }
 0x1b3   :  { %v73_v32 = vld [vmem:[#allocation4] sm:$0xff] }
 0x1bd   :  { %v122_v29 = vpop.eup %121 }
 0x1be   :  { %v71_v30 = vmul.f32 0.6931472, %v122_v29 }
 0x1c0   :  { %v72_v33 = vadd.f32 %v71_v30, %v68_v31 }
 0x1c2   :  { %v74_v34 = vsub.f32 %v72_v33, %v73_v32 }
 0x1c4   :  { %v82_v35 = vsel %vm16_vm0, %v74_v34, 0.0 }
 0x1c5   :  { %83 = vadd.xlane.f32.xlu1 %v82_v35 }
 0x24e   :  { %v84_v36 = vpop.xlane.xlu1 %83 }
 0x24f   :  { %v85_v37 = vrot.slane %v84_v36, 4 }
 0x251   :  { %v86_v38 = vadd.f32 %v85_v37, %v84_v36 }
 0x253   :  { %v87_v39 = vrot.slane %v86_v38, 2 }
 0x255   :  { %v88_v40 = vadd.f32 %v87_v39, %v86_v38 }
 0x257   :  { %v89_v41 = vrot.slane %v88_v40, 1 }
 0x259   :  { %v90_v42 = vadd.f32 %v89_v41, %v88_v40 }
 0x25b   :  { %108 = vpush %v90_v42 }
 0x28c   :  { %s109_s13 = spop %108 }
 0x28d   :  { %v92_v43 = vstv %s109_s13 }
 0x28e   :  { %93 = vst [vmem:[#allocation5] sm:$0xff] %v92_v43 }
 0x28f   :  { %134 = shalt.err (!%p131_p4)
}
 0x290   :  { %103 = dma.vmem_to_hbm [thread:$0]  %s101_s1, 128, %s183_s2, [#allocation6]  }
 0x291   :  { %143 = dma.done.wait [#allocation6], 128  }
 0x292   :  { %144 = vsyncadd [#allocation6], 4294967168 }
 0x293   :  { %107 = vsyncpa [#allocation6], 1 }

</bundles_post_ra>
